<compile_context>
chip_gen: v6e
topology: v6e:2x2x1
jax: 0.10.0
libtpu: 0.0.40
codegen_flags: <defaults>
</compile_context>

<pallas_src>
import jax
import jax.numpy as jnp
from jax.experimental import pallas as pl
from jax.experimental.pallas import tpu as pltpu

LANES = 128


def _padded_len(n: int) -> int:
    return ((n + LANES - 1) // LANES) * LANES


# ---------------------------------------------------------------------------
# Parameter initialization (lane-dense padding hoisted to init).
# ---------------------------------------------------------------------------
def init_weight(num_experts: int, init_lambda: float, dtype=jnp.float32) -> jax.Array:
    """Logical 1-D parameter, matching nn.init.constant_(weight, init_lambda)."""
    return jnp.full((num_experts,), init_lambda, dtype=dtype)


def init_weight_padded(num_experts: int, init_lambda: float, dtype=jnp.float32) -> jax.Array:
    """Lane-dense (1, ceil(n/128)*128) storage for the parameter.

    Padding is done once here, not per forward call, so the kernelized path has
    no per-call jnp.pad / reshape HLOs around the custom call.
    """
    p = _padded_len(num_experts)
    w = jnp.zeros((1, p), dtype=dtype)
    return w.at[0, :num_experts].set(init_lambda)


# ---------------------------------------------------------------------------
# Hot path: no kernel.  A parameter pass-through should cost nothing.
# ---------------------------------------------------------------------------
def depth_0_gate_forward(weight: jax.Array, *args, **kwargs) -> jax.Array:
    """Forward pass of Depth_0_Gate: returns `weight` (shape [num_experts]).

    Extra positional/keyword args are accepted and ignored, mirroring the
    PyTorch module's `forward(*args, **kwargs)`.
    """
    return jnp.asarray(weight)


# ---------------------------------------------------------------------------
# Kernelized variant A: gridless whole-array VMEM copy on pre-padded storage.
# Only for callers that contractually require a pallas_call boundary.
# ---------------------------------------------------------------------------
def _gate_copy_kernel(w_ref, o_ref):
    o_ref[...] = w_ref[...]


def depth_0_gate_forward_kernelized(weight_padded: jax.Array, num_experts: int) -> jax.Array:
    nbytes = weight_padded.size * weight_padded.dtype.itemsize
    out = pl.pallas_call(
        _gate_copy_kernel,
        out_shape=jax.ShapeDtypeStruct(weight_padded.shape, weight_padded.dtype),
        # No grid, no index_maps: single whole-array block in VMEM.
        in_specs=[pl.BlockSpec(memory_space=pltpu.MemorySpace.VMEM)],
        out_specs=pl.BlockSpec(memory_space=pltpu.MemorySpace.VMEM),
        # Near-zero cost hint so XLA overlaps the custom call with neighbors.
        cost_estimate=pl.CostEstimate(
            flops=0, transcendentals=0, bytes_accessed=2 * nbytes),
        # NOTE: no input_output_aliases — the input is the live pre-padded
        # parameter; donating it would force a defensive copy.
    )(weight_padded)
    # Single cheap slice at the boundary to honor the [num_experts] contract.
    # Fused consumers should read the padded row (or use the SMEM variant).
    return out[0, :num_experts]


# ---------------------------------------------------------------------------
# Kernelized variant B: scalar-consumed gate weights via SMEM, no padding.
# ---------------------------------------------------------------------------
def _gate_copy_smem_kernel(w_ref, o_ref):
    # Static unroll over a handful of experts; scalar SMEM copies.
    for i in range(o_ref.shape[0]):
        o_ref[i] = w_ref[i]


def depth_0_gate_forward_smem(weight: jax.Array, *args, **kwargs) -> jax.Array:
    n = weight.shape[0]
    nbytes = n * weight.dtype.itemsize
    return pl.pallas_call(
        _gate_copy_smem_kernel,
        out_shape=jax.ShapeDtypeStruct((n,), weight.dtype),
        in_specs=[pl.BlockSpec(memory_space=pltpu.MemorySpace.SMEM)],
        out_specs=pl.BlockSpec(memory_space=pltpu.MemorySpace.SMEM),
        cost_estimate=pl.CostEstimate(
            flops=0, transcendentals=0, bytes_accessed=2 * nbytes),
    )(weight)


# ---------------------------------------------------------------------------
# Recommended production pattern: fuse the gate read into the consumer kernel.
# The gate never gets its own kernel — it rides into the combine kernel as an
# SMEM operand and is read as scalars inside the body.
# ---------------------------------------------------------------------------
def _fused_moe_combine_kernel(gate_ref, experts_ref, o_ref):
    # gate_ref: SMEM (E,)   experts_ref: VMEM (E, M, N)   o_ref: VMEM (M, N)
    acc = gate_ref[0] * experts_ref[0]
    for e in range(1, experts_ref.shape[0]):
        acc = acc + gate_ref[e] * experts_ref[e]
    o_ref[...] = acc.astype(o_ref.dtype)


def fused_gate_combine(weight: jax.Array, expert_outputs: jax.Array) -> jax.Array:
    """out = sum_e weight[e] * expert_outputs[e]  (gate fused into consumer)."""
    e, m, n = expert_outputs.shape
    itemsize = expert_outputs.dtype.itemsize
    nbytes = expert_outputs.size * itemsize + m * n * itemsize + weight.size * weight.dtype.itemsize
    return pl.pallas_call(
        _fused_moe_combine_kernel,
        out_shape=jax.ShapeDtypeStruct((m, n), expert_outputs.dtype),
        in_specs=[
            pl.BlockSpec(memory_space=pltpu.MemorySpace.SMEM),   # gate weight
            pl.BlockSpec(memory_space=pltpu.MemorySpace.VMEM),   # expert outputs
        ],
        out_specs=pl.BlockSpec(memory_space=pltpu.MemorySpace.VMEM),
        cost_estimate=pl.CostEstimate(
            flops=2 * e * m * n, transcendentals=0, bytes_accessed=nbytes),
    )(weight, expert_outputs)


if __name__ == "__main__":
    num_experts = 8
    init_lambda = 0.3

    weight = init_weight(num_experts, init_lambda)                 # logical [E]
    weight_padded = init_weight_padded(num_experts, init_lambda)   # lane-dense (1, 128)

    # Dummy input (ignored by the gate), shaped like a small NCHW activation.
    key = jax.random.PRNGKey(0)
    x = jax.random.normal(key, (2, 4, 16, 16), dtype=jnp.float32)

    expected = jnp.full((num_experts,), init_lambda, dtype=jnp.float32)

    # 1) Fast path (no kernel) — recommended production path for the bare gate.
    out_fast = jax.block_until_ready(depth_0_gate_forward(weight, x))
    assert out_fast.shape == (num_experts,), out_fast.shape
    assert jnp.allclose(out_fast, expected), (out_fast, expected)

    # 2) Kernelized VMEM path on pre-padded parameter storage.
    out_vmem = jax.block_until_ready(
        depth_0_gate_forward_kernelized(weight_padded, num_experts))
    assert out_vmem.shape == (num_experts,), out_vmem.shape
    assert jnp.allclose(out_vmem, expected), (out_vmem, expected)

    # 3) SMEM pass-through path (no padding, scalar-consumed gate weights).
    out_smem = jax.block_until_ready(depth_0_gate_forward_smem(weight, x))
    assert out_smem.shape == (num_experts,), out_smem.shape
    assert jnp.allclose(out_smem, expected), (out_smem, expected)

    # 4) Fusion demo: gate consumed inside a downstream combine kernel (the
    #    gate kernel disappears entirely).
    kexp = jax.random.PRNGKey(1)
    expert_outputs = jax.random.normal(kexp, (num_experts, 8, 128), dtype=jnp.float32)
    out_fused = jax.block_until_ready(fused_gate_combine(weight, expert_outputs))
    ref_fused = jnp.einsum("e,emn->mn", weight, expert_outputs)
    assert out_fused.shape == (8, 128), out_fused.shape
    assert jnp.allclose(out_fused, ref_fused, atol=1e-5, rtol=1e-5)

    print("KERNEL_OK")
</pallas_src>

<mosaic_0001>
module attributes {stable_mosaic.version = 11 : i64} {
  func.func @_gate_copy_kernel(%arg0: memref<1x128xf32, #tpu.memory_space<vmem>>, %arg1: memref<1x128xf32, #tpu.memory_space<vmem>>) attributes {dimension_semantics = [], scalar_prefetch = 0 : i64, scratch_operands = 0 : i64, tpu.core_type = #tpu.core_type<tc>} {
    %c0 = arith.constant 0 : index
    %c0_0 = arith.constant 0 : index
    %0 = vector.load %arg0[%c0, %c0_0] : memref<1x128xf32, #tpu.memory_space<vmem>>, vector<1x128xf32>
    %c0_1 = arith.constant 0 : index
    %c0_2 = arith.constant 0 : index
    %1 = vector.load %arg1[%c0_1, %c0_2] : memref<1x128xf32, #tpu.memory_space<vmem>>, vector<1x128xf32>
    tpu.vector_store %arg1[%c0_1, %c0_2], %0 {strides = array<i32>} : memref<1x128xf32, #tpu.memory_space<vmem>>, vector<1x128xf32>,
    return
  }
}

</mosaic_0001>

<bundles_post_ra>
// kernel: tpu_custom_call.1
= control target key start
LH: loop header
LB: loop body
LE: loop exit
PB: predicated region body
PF: predicated region fallthrough
CT: control target
= control target key end

     0   :  { %6 = vsyncpa [#allocation3], 0  ;;  %s102_s0 = inlined_call_operand.hbm [shape: f32[1,128], index: 0, kind: input, shape index: {}]   ;;  %s103_s1 = inlined_call_operand.hbm [shape: f32[1,128], index: 1, kind: output, shape index: {}]  }
   0x1   :  { %7 = vsyncpa [#allocation4], 0  ;;  %s84_s6 = smov [#allocation2]  }
   0x2   :  { %s14_s7 = sshll.u32 %s84_s6, 4  ;;  %s15_s7 = int_to_ptr.vmem [resolvable:$true] %s14_s7 }
   0x3   :  { %s48_s8 = scalar_lea.vmem %s15_s7, 16  ;;  %s52_s9 = scalar_lea.vmem %s15_s7, 32 }
   0x4   :  { %p49_p0 = scmp.ne.s32.totalorder %s15_s7, %s48_s8  ;;  %p53_p1 = scmp.lt.s32.totalorder %s15_s7, %s15_s7 }
   0x5   :  { %p54_p2 = scmp.lt.s32.totalorder %s52_s9, %s48_s8 }
   0x7   :  { %p55_p3 = por %p54_p2, %p53_p1 }
   0x9   :  { %p56_p4 = pnand %p55_p3, %p49_p0 }
   0xb   :  { %59 = shalt.err (!%p56_p4)
}
   0xc   :  { %17 = dma.hbm_to_vmem [thread:$0]  %s102_s0, 16, %s15_s7, [#allocation3]  }
   0xd   :  { %80 = dma.done.wait [#allocation3], 16  }
   0xe   :  { %81 = vsyncadd [#allocation3], 4294967280  ;;  %s85_s12 = smov [#allocation5]   ;;  %v21_v0 = vld [vmem:[#allocation2] sm:$0x1] }
   0xf   :  { %s29_s13 = sshll.u32 %s85_s12, 4  ;;  %22 = vst [vmem:[#allocation5] sm:$0x1] %v21_v0  ;;  %s30_s13 = int_to_ptr.vmem [resolvable:$true] %s29_s13 }
  0x10   :  { %s60_s14 = scalar_lea.vmem %s30_s13, 16  ;;  %s64_s15 = scalar_lea.vmem %s30_s13, 32 }
  0x11   :  { %p61_p5 = scmp.ne.s32.totalorder %s30_s13, %s60_s14  ;;  %p65_p6 = scmp.lt.s32.totalorder %s30_s13, %s30_s13 }
  0x12   :  { %p66_p7 = scmp.lt.s32.totalorder %s64_s15, %s60_s14 }
  0x14   :  { %p67_p8 = por %p66_p7, %p65_p6 }
  0x16   :  { %p68_p9 = pnand %p67_p8, %p61_p5 }
  0x18   :  { %71 = shalt.err (!%p68_p9)
}
  0x19   :  { %32 = dma.vmem_to_hbm [thread:$0]  %s30_s13, 16, %s103_s1, [#allocation4]  }
  0x1a   :  { %82 = dma.done.wait [#allocation4], 16  }
  0x1b   :  { %83 = vsyncadd [#allocation4], 4294967280 }
  0x1c   :  { %36 = vsyncpa [#allocation3], 1 }
  0x1d   :  { %37 = vsyncpa [#allocation4], 1 }

</bundles_post_ra>
